<compile_context>
chip_gen: v5e
topology: v5e:2x2
jax: 0.10.0
libtpu: 0.0.40
codegen_flags: <defaults>
</compile_context>

<pallas_src>
import jax
import jax.numpy as jnp
from jax import lax
from jax.experimental import pallas as pl
from jax.experimental.pallas import tpu as pltpu


# ----------------------------- fused kernel -----------------------------
def fused_mha_kernel(a_ref, c_ref, q_ref, ctx_ref, dt_ref,
                     w_in_ref, w_mix_ref, w_q_ref, w_lin_ref, b_lin_ref,
                     out_ref, qg_ref, acc_ref):
    b = pl.program_id(0)
    H = w_mix_ref.shape[0]
    D = q_ref.shape[2]

    q = q_ref[0]            # (tq, D)   compute dtype
    ctx = ctx_ref[0]        # (Tc, D)   compute dtype
    dt = dt_ref[0]          # (tq, Tc)  f32
    c = c_ref[0]            # scalar    f32 (SMEM)

    # linear_in for ALL heads in one lane-dense GEMM: (tq, D) @ (D, H*D).
    # Stored in a VMEM scratch so per-head slices are cheap loads and the slab is
    # not a live vreg value across the unrolled head loop.
    qg_ref[...] = jnp.dot(q, w_in_ref[...], preferred_element_type=jnp.float32)

    # Hoisted out of the head loop: one (tq, Tc) VPU pass instead of H.
    neg_cdt = (-c) * dt                                          # (tq, Tc) f32

    # Per-head softmax / Hawkes decay / mix / output projection.  H is a small
    # static Python int -> unrolls; temporaries die each iteration because results
    # are committed to acc_ref lane slices.
    for h in range(H):
        qg_h = qg_ref[:, h * D:(h + 1) * D]                      # (tq, D) f32
        # scores = qg_h @ ctx.T via contracting dims (no explicit data transpose)
        scores = lax.dot_general(qg_h.astype(ctx.dtype), ctx,
                                 (((1,), (1,)), ((), ())),
                                 preferred_element_type=jnp.float32)   # (tq, Tc)
        scores = scores - jnp.max(scores, axis=-1, keepdims=True)
        e = jnp.exp(scores)                                       # f32 (EUP)
        inv = 1.0 / jnp.sum(e, axis=-1, keepdims=True)            # exact normalization
        decay = jnp.exp(a_ref[b, h] * neg_cdt)                    # (tq, Tc) f32 (EUP)
        hw = (e * decay) * inv                                     # softmax * Hawkes decay
        mix_h = jnp.dot(hw.astype(ctx.dtype), ctx,
                        preferred_element_type=jnp.float32)        # (tq, D) f32
        # Compact per-head output projection (no block-diagonal zero padding): the
        # result lands in this head's D-lane slice of the lane-dense accumulator.
        head_out = (jnp.dot(mix_h.astype(w_mix_ref.dtype), w_mix_ref[h],
                            preferred_element_type=jnp.float32) +
                    jnp.dot(qg_h.astype(w_q_ref.dtype), w_q_ref[h],
                            preferred_element_type=jnp.float32))
        acc_ref[:, h * D:(h + 1) * D] = head_out

    out_cat = jnp.tanh(acc_ref[...])                               # (tq, H*D) f32
    # fused final linear: (tq, H*D) @ (H*D, D) + bias
    y = jnp.dot(out_cat.astype(w_lin_ref.dtype), w_lin_ref[...],
                preferred_element_type=jnp.float32) + b_lin_ref[...]
    out_ref[0] = y.astype(out_ref.dtype)


# ----------------------------- wrapper -----------------------------
def _pick_q_tile(tq_total, max_tile=256):
    if tq_total <= max_tile:
        return tq_total
    for t in range(max_tile, 7, -8):       # multiples of 8 (sublane) that divide Tq
        if tq_total % t == 0:
            return t
    return tq_total                          # fall back: single tile


def multi_head_attention(query, context, delta_t, params, c=1.0,
                         *, compute_dtype=jnp.float32, max_q_tile=256):
    B, Tq, D = query.shape
    Tc = context.shape[1]
    w_in, w_out = params["w_in"], params["w_out"]
    H = w_in.shape[0]
    HD = H * D

    tq = _pick_q_tile(Tq, max_q_tile)
    n_qt = Tq // tq

    # One-time weight re-layouts (compact: H*D^2 params, not (H*D)^2):
    #   w_in_cat[:, h*D:(h+1)*D] = w_in[h].T        -> batched linear_in
    #   w_mix[h] = w_out[h][:, :D].T ; w_q[h] = w_out[h][:, D:].T
    #   w_lin_t  = w_lin.T                          -> fused final linear
    w_in_cat = jnp.transpose(w_in, (2, 0, 1)).reshape(D, HD).astype(compute_dtype)
    w_mix = jnp.transpose(w_out[:, :, :D], (0, 2, 1)).astype(compute_dtype)   # (H, D, D)
    w_q = jnp.transpose(w_out[:, :, D:], (0, 2, 1)).astype(compute_dtype)     # (H, D, D)
    w_lin_t = params["w_lin"].T.astype(compute_dtype)                         # (H*D, D)
    b_lin = params["b_lin"].reshape(1, D).astype(jnp.float32)
    a_bh = params["a"].T.astype(jnp.float32)                                  # (B, H)
    c_arr = jnp.asarray([c], dtype=jnp.float32)

    q_c = query.astype(compute_dtype)
    ctx_c = context.astype(compute_dtype)
    dt_f32 = delta_t.astype(jnp.float32)          # decay / elementwise math stays f32

    smem = pl.BlockSpec(memory_space=pltpu.MemorySpace.SMEM)
    return pl.pallas_call(
        fused_mha_kernel,
        out_shape=jax.ShapeDtypeStruct((B, Tq, D), jnp.float32),
        grid=(B, n_qt),
        in_specs=[
            smem,                                                 # a       (B, H)
            smem,                                                 # c       (1,)
            pl.BlockSpec((1, tq, D), lambda b, t: (b, t, 0)),     # query tile
            pl.BlockSpec((1, Tc, D), lambda b, t: (b, 0, 0)),     # context (per batch)
            pl.BlockSpec((1, tq, Tc), lambda b, t: (b, t, 0)),    # delta_t tile
            pl.BlockSpec((D, HD), lambda b, t: (0, 0)),           # W_in (all heads)
            pl.BlockSpec((H, D, D), lambda b, t: (0, 0, 0)),      # W_out mix half (compact)
            pl.BlockSpec((H, D, D), lambda b, t: (0, 0, 0)),      # W_out query half (compact)
            pl.BlockSpec((HD, D), lambda b, t: (0, 0)),           # final linear W^T
            pl.BlockSpec((1, D), lambda b, t: (0, 0)),            # final linear bias
        ],
        out_specs=pl.BlockSpec((1, tq, D), lambda b, t: (b, t, 0)),
        scratch_shapes=[pltpu.VMEM((tq, HD), jnp.float32),        # qg slab
                        pltpu.VMEM((tq, HD), jnp.float32)],       # per-head output acc
        compiler_params=pltpu.CompilerParams(
            dimension_semantics=("parallel", "parallel"),
            vmem_limit_bytes=32 * 1024 * 1024),                   # > v5e's 16 MiB default
    )(a_bh, c_arr, q_c, ctx_c, dt_f32, w_in_cat, w_mix, w_q, w_lin_t, b_lin)


# ----------------------------- pure-JAX reference -----------------------------
def reference(query, context, delta_t, params, c=1.0):
    hp = lax.Precision.HIGHEST   # accurate ground truth (TPU default f32 dot is bf16-ish)
    H = params["w_in"].shape[0]
    outs = []
    for h in range(H):
        qg = jnp.einsum("bqd,ed->bqe", query, params["w_in"][h], precision=hp)
        scores = jnp.einsum("bqd,bkd->bqk", qg, context, precision=hp)
        weights = jax.nn.softmax(scores, axis=-1)
        decay = jnp.exp(-c * params["a"][h][:, None, None] * delta_t)
        hw = weights * decay
        mix = jnp.einsum("bqk,bkd->bqd", hw, context, precision=hp)
        combined = jnp.concatenate([mix, qg], axis=-1)
        outs.append(jnp.tanh(
            jnp.einsum("bqe,de->bqd", combined, params["w_out"][h], precision=hp)))
    x_cat = jnp.concatenate(outs, axis=-1)
    return jnp.einsum("bqe,de->bqd", x_cat, params["w_lin"], precision=hp) + params["b_lin"]


if __name__ == "__main__":
    B, Tq, Tc, D, H = 2, 8, 8, 32, 4

    key = jax.random.PRNGKey(0)
    ks = jax.random.split(key, 8)
    query = jax.random.normal(ks[0], (B, Tq, D), dtype=jnp.float32)
    context = jax.random.normal(ks[1], (B, Tc, D), dtype=jnp.float32)
    delta_t = jax.random.uniform(ks[2], (B, Tq, Tc), dtype=jnp.float32)

    params = {
        "w_in":  0.1 * jax.random.normal(ks[3], (H, D, D), dtype=jnp.float32),
        "w_out": 0.1 * jax.random.normal(ks[4], (H, D, 2 * D), dtype=jnp.float32),
        "a":     jax.random.uniform(ks[5], (H, B), dtype=jnp.float32),
        "w_lin": 0.1 * jax.random.normal(ks[6], (D, H * D), dtype=jnp.float32),
        "b_lin": 0.01 * jax.random.normal(ks[7], (D,), dtype=jnp.float32),
    }

    ref = jax.block_until_ready(reference(query, context, delta_t, params, c=1.0))

    # f32 MXU-operand path (primary correctness check). Tolerance covers the case
    # where the kernel's dots are executed by XLA at DEFAULT (bf16-level) f32 matmul
    # precision (e.g. interpret mode) while the reference runs at HIGHEST precision.
    out = jax.block_until_ready(
        multi_head_attention(query, context, delta_t, params, c=1.0))
    assert out.shape == (B, Tq, D)
    assert jnp.allclose(out, ref, atol=2e-2, rtol=2e-2), "f32 kernel mismatch vs reference"

    # bf16 MXU-operand path (perf-review recommendation): bf16 inputs/weights, f32
    # accumulation, f32 softmax/exp/tanh. Looser tolerance for bf16 operand rounding.
    out_bf16 = jax.block_until_ready(
        multi_head_attention(query, context, delta_t, params, c=1.0,
                             compute_dtype=jnp.bfloat16))
    assert out_bf16.shape == (B, Tq, D)
    assert jnp.allclose(out_bf16, ref, atol=5e-2, rtol=5e-2), "bf16 kernel mismatch vs reference"

    print("KERNEL_OK")
</pallas_src>

<mosaic_0001>
module attributes {stable_mosaic.version = 11 : i64} {
  func.func @fused_mha_kernel(%arg0: i32, %arg1: i32, %arg2: memref<2x4xf32, #tpu.memory_space<smem>>, %arg3: memref<1xf32, #tpu.memory_space<smem>>, %arg4: memref<1x8x32xf32, #tpu.memory_space<vmem>>, %arg5: memref<1x8x32xf32, #tpu.memory_space<vmem>>, %arg6: memref<1x8x8xf32, #tpu.memory_space<vmem>>, %arg7: memref<32x128xf32, #tpu.memory_space<vmem>>, %arg8: memref<4x32x32xf32, #tpu.memory_space<vmem>>, %arg9: memref<4x32x32xf32, #tpu.memory_space<vmem>>, %arg10: memref<128x32xf32, #tpu.memory_space<vmem>>, %arg11: memref<1x32xf32, #tpu.memory_space<vmem>>, %arg12: memref<1x8x32xf32, #tpu.memory_space<vmem>>, %arg13: memref<8x128xf32, #tpu.memory_space<vmem>>, %arg14: memref<8x128xf32, #tpu.memory_space<vmem>>) attributes {dimension_semantics = [#tpu.dimension_semantics<parallel>, #tpu.dimension_semantics<parallel>], iteration_bounds = array<i64: 2, 1>, scalar_prefetch = 0 : i64, scratch_operands = 2 : i64, tpu.core_type = #tpu.core_type<tc>, window_params = [{transform_indices = @transform_0, window_bounds = array<i64: 2, 4>}, {transform_indices = @transform_1, window_bounds = array<i64: 1>}, {transform_indices = @transform_2, window_bounds = array<i64: 1, 8, 32>}, {transform_indices = @transform_3, window_bounds = array<i64: 1, 8, 32>}, {transform_indices = @transform_4, window_bounds = array<i64: 1, 8, 8>}, {pipeline_mode = #tpu.pipeline_mode<synchronous>, transform_indices = @transform_5, window_bounds = array<i64: 32, 128>}, {pipeline_mode = #tpu.pipeline_mode<synchronous>, transform_indices = @transform_6, window_bounds = array<i64: 4, 32, 32>}, {pipeline_mode = #tpu.pipeline_mode<synchronous>, transform_indices = @transform_7, window_bounds = array<i64: 4, 32, 32>}, {pipeline_mode = #tpu.pipeline_mode<synchronous>, transform_indices = @transform_8, window_bounds = array<i64: 128, 32>}, {pipeline_mode = #tpu.pipeline_mode<synchronous>, transform_indices = @transform_9, window_bounds = array<i64: 1, 32>}, {transform_indices = @transform_10, window_bounds = array<i64: 1, 8, 32>}]} {
    %c0 = arith.constant 0 : index
    %c0_0 = arith.constant 0 : index
    %c0_1 = arith.constant 0 : index
    %0 = vector.load %arg4[%c0, %c0_0, %c0_1] : memref<1x8x32xf32, #tpu.memory_space<vmem>>, vector<1x8x32xf32>
    %1 = vector.shape_cast %0 : vector<1x8x32xf32> to vector<8x32xf32>
    %c0_2 = arith.constant 0 : index
    %c0_3 = arith.constant 0 : index
    %c0_4 = arith.constant 0 : index
    %2 = vector.load %arg5[%c0_2, %c0_3, %c0_4] : memref<1x8x32xf32, #tpu.memory_space<vmem>>, vector<1x8x32xf32>
    %3 = vector.shape_cast %2 : vector<1x8x32xf32> to vector<8x32xf32>
    %c0_5 = arith.constant 0 : index
    %c0_6 = arith.constant 0 : index
    %c0_7 = arith.constant 0 : index
    %4 = vector.load %arg6[%c0_5, %c0_6, %c0_7] : memref<1x8x8xf32, #tpu.memory_space<vmem>>, vector<1x8x8xf32>
    %5 = vector.shape_cast %4 : vector<1x8x8xf32> to vector<8x8xf32>
    %c0_8 = arith.constant 0 : index
    %6 = memref.load %arg3[%c0_8] : memref<1xf32, #tpu.memory_space<smem>>
    %c0_9 = arith.constant 0 : index
    %c0_10 = arith.constant 0 : index
    %7 = vector.load %arg7[%c0_9, %c0_10] : memref<32x128xf32, #tpu.memory_space<vmem>>, vector<32x128xf32>
    %cst = arith.constant dense<0.000000e+00> : vector<8x128xf32>
    %8 = tpu.matmul %1, %7, %cst {dimension_numbers = #tpu.dot_dimension_numbers<[1], [0], [0], [1], [0, 0, 1, 1], [], []>} : vector<8x32xf32>, vector<32x128xf32>, vector<8x128xf32> -> vector<8x128xf32>
    %c0_11 = arith.constant 0 : index
    %c0_12 = arith.constant 0 : index
    %9 = vector.load %arg13[%c0_11, %c0_12] : memref<8x128xf32, #tpu.memory_space<vmem>>, vector<8x128xf32>
    tpu.vector_store %arg13[%c0_11, %c0_12], %8 {strides = array<i32>} : memref<8x128xf32, #tpu.memory_space<vmem>>, vector<8x128xf32>,
    %cst_13 = arith.constant 0.000000e+00 : f32
    %10 = arith.subf %cst_13, %6 : f32
    %11 = vector.broadcast %10 : f32 to vector<8x8xf32>
    %12 = arith.mulf %11, %5 : vector<8x8xf32>
    %c0_14 = arith.constant 0 : index
    %c0_15 = arith.constant 0 : index
    %13 = vector.load %arg13[%c0_14, %c0_15] : memref<8x128xf32, #tpu.memory_space<vmem>>, vector<8x32xf32>
    %cst_16 = arith.constant dense<0.000000e+00> : vector<8x8xf32>
    %14 = tpu.matmul %13, %3, %cst_16 {dimension_numbers = #tpu.dot_dimension_numbers<[1], [1], [0], [0], [0, 0, 1, 0], [], []>} : vector<8x32xf32>, vector<8x32xf32>, vector<8x8xf32> -> vector<8x8xf32>
    %cst_17 = arith.constant dense<0xFF800000> : vector<8xf32>
    %15 = vector.multi_reduction <maximumf>, %14, %cst_17 [1] : vector<8x8xf32> to vector<8xf32>
    %16 = vector.shape_cast %15 : vector<8xf32> to vector<8x1xf32>
    %17 = vector.broadcast %16 : vector<8x1xf32> to vector<8x8xf32>
    %18 = arith.subf %14, %17 : vector<8x8xf32>
    %19 = math.exp %18 : vector<8x8xf32>
    %cst_18 = arith.constant dense<0.000000e+00> : vector<8xf32>
    %20 = vector.multi_reduction <add>, %19, %cst_18 [1] : vector<8x8xf32> to vector<8xf32>
    %21 = vector.shape_cast %20 : vector<8xf32> to vector<8x1xf32>
    %cst_19 = arith.constant 1.000000e+00 : f32
    %22 = vector.broadcast %cst_19 : f32 to vector<8x1xf32>
    %23 = arith.divf %22, %21 : vector<8x1xf32>
    %24 = arith.index_cast %arg0 : i32 to index
    %c0_20 = arith.constant 0 : index
    %25 = memref.load %arg2[%24, %c0_20] : memref<2x4xf32, #tpu.memory_space<smem>>
    %26 = vector.broadcast %25 : f32 to vector<8x8xf32>
    %27 = arith.mulf %26, %12 : vector<8x8xf32>
    %28 = math.exp %27 : vector<8x8xf32>
    %29 = arith.mulf %19, %28 : vector<8x8xf32>
    %30 = vector.broadcast %23 : vector<8x1xf32> to vector<8x8xf32>
    %31 = arith.mulf %29, %30 : vector<8x8xf32>
    %cst_21 = arith.constant dense<0.000000e+00> : vector<8x32xf32>
    %32 = tpu.matmul %31, %3, %cst_21 {dimension_numbers = #tpu.dot_dimension_numbers<[1], [0], [0], [1], [0, 0, 1, 1], [], []>} : vector<8x8xf32>, vector<8x32xf32>, vector<8x32xf32> -> vector<8x32xf32>
    %c0_22 = arith.constant 0 : index
    %c0_23 = arith.constant 0 : index
    %c0_24 = arith.constant 0 : index
    %33 = vector.load %arg8[%c0_22, %c0_23, %c0_24] : memref<4x32x32xf32, #tpu.memory_space<vmem>>, vector<1x32x32xf32>
    %34 = vector.shape_cast %33 : vector<1x32x32xf32> to vector<32x32xf32>
    %cst_25 = arith.constant dense<0.000000e+00> : vector<8x32xf32>
    %35 = tpu.matmul %32, %34, %cst_25 {dimension_numbers = #tpu.dot_dimension_numbers<[1], [0], [0], [1], [0, 0, 1, 1], [], []>} : vector<8x32xf32>, vector<32x32xf32>, vector<8x32xf32> -> vector<8x32xf32>
    %c0_26 = arith.constant 0 : index
    %c0_27 = arith.constant 0 : index
    %c0_28 = arith.constant 0 : index
    %36 = vector.load %arg9[%c0_26, %c0_27, %c0_28] : memref<4x32x32xf32, #tpu.memory_space<vmem>>, vector<1x32x32xf32>
    %37 = vector.shape_cast %36 : vector<1x32x32xf32> to vector<32x32xf32>
    %cst_29 = arith.constant dense<0.000000e+00> : vector<8x32xf32>
    %38 = tpu.matmul %13, %37, %cst_29 {dimension_numbers = #tpu.dot_dimension_numbers<[1], [0], [0], [1], [0, 0, 1, 1], [], []>} : vector<8x32xf32>, vector<32x32xf32>, vector<8x32xf32> -> vector<8x32xf32>
    %39 = arith.addf %35, %38 : vector<8x32xf32>
    %c0_30 = arith.constant 0 : index
    %c0_31 = arith.constant 0 : index
    %40 = vector.load %arg14[%c0_30, %c0_31] : memref<8x128xf32, #tpu.memory_space<vmem>>, vector<8x32xf32>
    tpu.vector_store %arg14[%c0_30, %c0_31], %39 {strides = array<i32>} : memref<8x128xf32, #tpu.memory_space<vmem>>, vector<8x32xf32>,
    %c0_32 = arith.constant 0 : index
    %c32 = arith.constant 32 : index
    %41 = vector.load %arg13[%c0_32, %c32] : memref<8x128xf32, #tpu.memory_space<vmem>>, vector<8x32xf32>
    %cst_33 = arith.constant dense<0.000000e+00> : vector<8x8xf32>
    %42 = tpu.matmul %41, %3, %cst_33 {dimension_numbers = #tpu.dot_dimension_numbers<[1], [1], [0], [0], [0, 0, 1, 0], [], []>} : vector<8x32xf32>, vector<8x32xf32>, vector<8x8xf32> -> vector<8x8xf32>
    %cst_34 = arith.constant dense<0xFF800000> : vector<8xf32>
    %43 = vector.multi_reduction <maximumf>, %42, %cst_34 [1] : vector<8x8xf32> to vector<8xf32>
    %44 = vector.shape_cast %43 : vector<8xf32> to vector<8x1xf32>
    %45 = vector.broadcast %44 : vector<8x1xf32> to vector<8x8xf32>
    %46 = arith.subf %42, %45 : vector<8x8xf32>
    %47 = math.exp %46 : vector<8x8xf32>
    %cst_35 = arith.constant dense<0.000000e+00> : vector<8xf32>
    %48 = vector.multi_reduction <add>, %47, %cst_35 [1] : vector<8x8xf32> to vector<8xf32>
    %49 = vector.shape_cast %48 : vector<8xf32> to vector<8x1xf32>
    %cst_36 = arith.constant 1.000000e+00 : f32
    %50 = vector.broadcast %cst_36 : f32 to vector<8x1xf32>
    %51 = arith.divf %50, %49 : vector<8x1xf32>
    %52 = arith.index_cast %arg0 : i32 to index
    %c1 = arith.constant 1 : index
    %53 = memref.load %arg2[%52, %c1] : memref<2x4xf32, #tpu.memory_space<smem>>
    %54 = vector.broadcast %53 : f32 to vector<8x8xf32>
    %55 = arith.mulf %54, %12 : vector<8x8xf32>
    %56 = math.exp %55 : vector<8x8xf32>
    %57 = arith.mulf %47, %56 : vector<8x8xf32>
    %58 = vector.broadcast %51 : vector<8x1xf32> to vector<8x8xf32>
    %59 = arith.mulf %57, %58 : vector<8x8xf32>
    %cst_37 = arith.constant dense<0.000000e+00> : vector<8x32xf32>
    %60 = tpu.matmul %59, %3, %cst_37 {dimension_numbers = #tpu.dot_dimension_numbers<[1], [0], [0], [1], [0, 0, 1, 1], [], []>} : vector<8x8xf32>, vector<8x32xf32>, vector<8x32xf32> -> vector<8x32xf32>
    %c1_38 = arith.constant 1 : index
    %c0_39 = arith.constant 0 : index
    %c0_40 = arith.constant 0 : index
    %61 = vector.load %arg8[%c1_38, %c0_39, %c0_40] : memref<4x32x32xf32, #tpu.memory_space<vmem>>, vector<1x32x32xf32>
    %62 = vector.shape_cast %61 : vector<1x32x32xf32> to vector<32x32xf32>
    %cst_41 = arith.constant dense<0.000000e+00> : vector<8x32xf32>
    %63 = tpu.matmul %60, %62, %cst_41 {dimension_numbers = #tpu.dot_dimension_numbers<[1], [0], [0], [1], [0, 0, 1, 1], [], []>} : vector<8x32xf32>, vector<32x32xf32>, vector<8x32xf32> -> vector<8x32xf32>
    %c1_42 = arith.constant 1 : index
    %c0_43 = arith.constant 0 : index
    %c0_44 = arith.constant 0 : index
    %64 = vector.load %arg9[%c1_42, %c0_43, %c0_44] : memref<4x32x32xf32, #tpu.memory_space<vmem>>, vector<1x32x32xf32>
    %65 = vector.shape_cast %64 : vector<1x32x32xf32> to vector<32x32xf32>
    %cst_45 = arith.constant dense<0.000000e+00> : vector<8x32xf32>
    %66 = tpu.matmul %41, %65, %cst_45 {dimension_numbers = #tpu.dot_dimension_numbers<[1], [0], [0], [1], [0, 0, 1, 1], [], []>} : vector<8x32xf32>, vector<32x32xf32>, vector<8x32xf32> -> vector<8x32xf32>
    %67 = arith.addf %63, %66 : vector<8x32xf32>
    %c0_46 = arith.constant 0 : index
    %c32_47 = arith.constant 32 : index
    %68 = vector.load %arg14[%c0_46, %c32_47] : memref<8x128xf32, #tpu.memory_space<vmem>>, vector<8x32xf32>
    tpu.vector_store %arg14[%c0_46, %c32_47], %67 {strides = array<i32>} : memref<8x128xf32, #tpu.memory_space<vmem>>, vector<8x32xf32>,
    %c0_48 = arith.constant 0 : index
    %c64 = arith.constant 64 : index
    %69 = vector.load %arg13[%c0_48, %c64] : memref<8x128xf32, #tpu.memory_space<vmem>>, vector<8x32xf32>
    %cst_49 = arith.constant dense<0.000000e+00> : vector<8x8xf32>
    %70 = tpu.matmul %69, %3, %cst_49 {dimension_numbers = #tpu.dot_dimension_numbers<[1], [1], [0], [0], [0, 0, 1, 0], [], []>} : vector<8x32xf32>, vector<8x32xf32>, vector<8x8xf32> -> vector<8x8xf32>
    %cst_50 = arith.constant dense<0xFF800000> : vector<8xf32>
    %71 = vector.multi_reduction <maximumf>, %70, %cst_50 [1] : vector<8x8xf32> to vector<8xf32>
    %72 = vector.shape_cast %71 : vector<8xf32> to vector<8x1xf32>
    %73 = vector.broadcast %72 : vector<8x1xf32> to vector<8x8xf32>
    %74 = arith.subf %70, %73 : vector<8x8xf32>
    %75 = math.exp %74 : vector<8x8xf32>
    %cst_51 = arith.constant dense<0.000000e+00> : vector<8xf32>
    %76 = vector.multi_reduction <add>, %75, %cst_51 [1] : vector<8x8xf32> to vector<8xf32>
    %77 = vector.shape_cast %76 : vector<8xf32> to vector<8x1xf32>
    %cst_52 = arith.constant 1.000000e+00 : f32
    %78 = vector.broadcast %cst_52 : f32 to vector<8x1xf32>
    %79 = arith.divf %78, %77 : vector<8x1xf32>
    %80 = arith.index_cast %arg0 : i32 to index
    %c2 = arith.constant 2 : index
    %81 = memref.load %arg2[%80, %c2] : memref<2x4xf32, #tpu.memory_space<smem>>
    %82 = vector.broadcast %81 : f32 to vector<8x8xf32>
    %83 = arith.mulf %82, %12 : vector<8x8xf32>
    %84 = math.exp %83 : vector<8x8xf32>
    %85 = arith.mulf %75, %84 : vector<8x8xf32>
    %86 = vector.broadcast %79 : vector<8x1xf32> to vector<8x8xf32>
    %87 = arith.mulf %85, %86 : vector<8x8xf32>
    %cst_53 = arith.constant dense<0.000000e+00> : vector<8x32xf32>
    %88 = tpu.matmul %87, %3, %cst_53 {dimension_numbers = #tpu.dot_dimension_numbers<[1], [0], [0], [1], [0, 0, 1, 1], [], []>} : vector<8x8xf32>, vector<8x32xf32>, vector<8x32xf32> -> vector<8x32xf32>
    %c2_54 = arith.constant 2 : index
    %c0_55 = arith.constant 0 : index
    %c0_56 = arith.constant 0 : index
    %89 = vector.load %arg8[%c2_54, %c0_55, %c0_56] : memref<4x32x32xf32, #tpu.memory_space<vmem>>, vector<1x32x32xf32>
    %90 = vector.shape_cast %89 : vector<1x32x32xf32> to vector<32x32xf32>
    %cst_57 = arith.constant dense<0.000000e+00> : vector<8x32xf32>
    %91 = tpu.matmul %88, %90, %cst_57 {dimension_numbers = #tpu.dot_dimension_numbers<[1], [0], [0], [1], [0, 0, 1, 1], [], []>} : vector<8x32xf32>, vector<32x32xf32>, vector<8x32xf32> -> vector<8x32xf32>
    %c2_58 = arith.constant 2 : index
    %c0_59 = arith.constant 0 : index
    %c0_60 = arith.constant 0 : index
    %92 = vector.load %arg9[%c2_58, %c0_59, %c0_60] : memref<4x32x32xf32, #tpu.memory_space<vmem>>, vector<1x32x32xf32>
    %93 = vector.shape_cast %92 : vector<1x32x32xf32> to vector<32x32xf32>
    %cst_61 = arith.constant dense<0.000000e+00> : vector<8x32xf32>
    %94 = tpu.matmul %69, %93, %cst_61 {dimension_numbers = #tpu.dot_dimension_numbers<[1], [0], [0], [1], [0, 0, 1, 1], [], []>} : vector<8x32xf32>, vector<32x32xf32>, vector<8x32xf32> -> vector<8x32xf32>
    %95 = arith.addf %91, %94 : vector<8x32xf32>
    %c0_62 = arith.constant 0 : index
    %c64_63 = arith.constant 64 : index
    %96 = vector.load %arg14[%c0_62, %c64_63] : memref<8x128xf32, #tpu.memory_space<vmem>>, vector<8x32xf32>
    tpu.vector_store %arg14[%c0_62, %c64_63], %95 {strides = array<i32>} : memref<8x128xf32, #tpu.memory_space<vmem>>, vector<8x32xf32>,
    %c0_64 = arith.constant 0 : index
    %c96 = arith.constant 96 : index
    %97 = vector.load %arg13[%c0_64, %c96] : memref<8x128xf32, #tpu.memory_space<vmem>>, vector<8x32xf32>
    %cst_65 = arith.constant dense<0.000000e+00> : vector<8x8xf32>
    %98 = tpu.matmul %97, %3, %cst_65 {dimension_numbers = #tpu.dot_dimension_numbers<[1], [1], [0], [0], [0, 0, 1, 0], [], []>} : vector<8x32xf32>, vector<8x32xf32>, vector<8x8xf32> -> vector<8x8xf32>
    %cst_66 = arith.constant dense<0xFF800000> : vector<8xf32>
    %99 = vector.multi_reduction <maximumf>, %98, %cst_66 [1] : vector<8x8xf32> to vector<8xf32>
    %100 = vector.shape_cast %99 : vector<8xf32> to vector<8x1xf32>
    %101 = vector.broadcast %100 : vector<8x1xf32> to vector<8x8xf32>
    %102 = arith.subf %98, %101 : vector<8x8xf32>
    %103 = math.exp %102 : vector<8x8xf32>
    %cst_67 = arith.constant dense<0.000000e+00> : vector<8xf32>
    %104 = vector.multi_reduction <add>, %103, %cst_67 [1] : vector<8x8xf32> to vector<8xf32>
    %105 = vector.shape_cast %104 : vector<8xf32> to vector<8x1xf32>
    %cst_68 = arith.constant 1.000000e+00 : f32
    %106 = vector.broadcast %cst_68 : f32 to vector<8x1xf32>
    %107 = arith.divf %106, %105 : vector<8x1xf32>
    %108 = arith.index_cast %arg0 : i32 to index
    %c3 = arith.constant 3 : index
    %109 = memref.load %arg2[%108, %c3] : memref<2x4xf32, #tpu.memory_space<smem>>
    %110 = vector.broadcast %109 : f32 to vector<8x8xf32>
    %111 = arith.mulf %110, %12 : vector<8x8xf32>
    %112 = math.exp %111 : vector<8x8xf32>
    %113 = arith.mulf %103, %112 : vector<8x8xf32>
    %114 = vector.broadcast %107 : vector<8x1xf32> to vector<8x8xf32>
    %115 = arith.mulf %113, %114 : vector<8x8xf32>
    %cst_69 = arith.constant dense<0.000000e+00> : vector<8x32xf32>
    %116 = tpu.matmul %115, %3, %cst_69 {dimension_numbers = #tpu.dot_dimension_numbers<[1], [0], [0], [1], [0, 0, 1, 1], [], []>} : vector<8x8xf32>, vector<8x32xf32>, vector<8x32xf32> -> vector<8x32xf32>
    %c3_70 = arith.constant 3 : index
    %c0_71 = arith.constant 0 : index
    %c0_72 = arith.constant 0 : index
    %117 = vector.load %arg8[%c3_70, %c0_71, %c0_72] : memref<4x32x32xf32, #tpu.memory_space<vmem>>, vector<1x32x32xf32>
    %118 = vector.shape_cast %117 : vector<1x32x32xf32> to vector<32x32xf32>
    %cst_73 = arith.constant dense<0.000000e+00> : vector<8x32xf32>
    %119 = tpu.matmul %116, %118, %cst_73 {dimension_numbers = #tpu.dot_dimension_numbers<[1], [0], [0], [1], [0, 0, 1, 1], [], []>} : vector<8x32xf32>, vector<32x32xf32>, vector<8x32xf32> -> vector<8x32xf32>
    %c3_74 = arith.constant 3 : index
    %c0_75 = arith.constant 0 : index
    %c0_76 = arith.constant 0 : index
    %120 = vector.load %arg9[%c3_74, %c0_75, %c0_76] : memref<4x32x32xf32, #tpu.memory_space<vmem>>, vector<1x32x32xf32>
    %121 = vector.shape_cast %120 : vector<1x32x32xf32> to vector<32x32xf32>
    %cst_77 = arith.constant dense<0.000000e+00> : vector<8x32xf32>
    %122 = tpu.matmul %97, %121, %cst_77 {dimension_numbers = #tpu.dot_dimension_numbers<[1], [0], [0], [1], [0, 0, 1, 1], [], []>} : vector<8x32xf32>, vector<32x32xf32>, vector<8x32xf32> -> vector<8x32xf32>
    %123 = arith.addf %119, %122 : vector<8x32xf32>
    %c0_78 = arith.constant 0 : index
    %c96_79 = arith.constant 96 : index
    %124 = vector.load %arg14[%c0_78, %c96_79] : memref<8x128xf32, #tpu.memory_space<vmem>>, vector<8x32xf32>
    tpu.vector_store %arg14[%c0_78, %c96_79], %123 {strides = array<i32>} : memref<8x128xf32, #tpu.memory_space<vmem>>, vector<8x32xf32>,
    %c0_80 = arith.constant 0 : index
    %c0_81 = arith.constant 0 : index
    %125 = vector.load %arg14[%c0_80, %c0_81] : memref<8x128xf32, #tpu.memory_space<vmem>>, vector<8x128xf32>
    %126 = math.tanh %125 : vector<8x128xf32>
    %c0_82 = arith.constant 0 : index
    %c0_83 = arith.constant 0 : index
    %127 = vector.load %arg10[%c0_82, %c0_83] : memref<128x32xf32, #tpu.memory_space<vmem>>, vector<128x32xf32>
    %cst_84 = arith.constant dense<0.000000e+00> : vector<8x32xf32>
    %128 = tpu.matmul %126, %127, %cst_84 {dimension_numbers = #tpu.dot_dimension_numbers<[1], [0], [0], [1], [0, 0, 1, 1], [], []>} : vector<8x128xf32>, vector<128x32xf32>, vector<8x32xf32> -> vector<8x32xf32>
    %c0_85 = arith.constant 0 : index
    %c0_86 = arith.constant 0 : index
    %129 = vector.load %arg11[%c0_85, %c0_86] : memref<1x32xf32, #tpu.memory_space<vmem>>, vector<1x32xf32>
    %130 = vector.broadcast %129 : vector<1x32xf32> to vector<8x32xf32>
    %131 = arith.addf %128, %130 : vector<8x32xf32>
    %c0_87 = arith.constant 0 : index
    %c0_88 = arith.constant 0 : index
    %c0_89 = arith.constant 0 : index
    %132 = vector.load %arg12[%c0_87, %c0_88, %c0_89] : memref<1x8x32xf32, #tpu.memory_space<vmem>>, vector<1x8x32xf32>
    %133 = vector.shape_cast %132 : vector<1x8x32xf32> to vector<8x32xf32>
    %134 = vector.shape_cast %131 : vector<8x32xf32> to vector<1x8x32xf32>
    tpu.vector_store %arg12[%c0_87, %c0_88, %c0_89], %134 {strides = array<i32>} : memref<1x8x32xf32, #tpu.memory_space<vmem>>, vector<1x8x32xf32>,
    return
  }
  func.func @transform_0(%arg0: i32, %arg1: i32) -> (i32, i32) {
    %c0_i32 = arith.constant 0 : i32
    %c0_i32_0 = arith.constant 0 : i32
    %c0_i32_1 = arith.constant 0 : i32
    return %c0_i32, %c0_i32_0 : i32, i32
  }
  func.func @transform_1(%arg0: i32, %arg1: i32) -> i32 {
    %c0_i32 = arith.constant 0 : i32
    %c0_i32_0 = arith.constant 0 : i32
    return %c0_i32 : i32
  }
  func.func @transform_2(%arg0: i32, %arg1: i32) -> (i32, i32, i32) {
    %c0_i32 = arith.constant 0 : i32
    %c0_i32_0 = arith.constant 0 : i32
    return %arg0, %arg1, %c0_i32 : i32, i32, i32
  }
  func.func @transform_3(%arg0: i32, %arg1: i32) -> (i32, i32, i32) {
    %c0_i32 = arith.constant 0 : i32
    %c0_i32_0 = arith.constant 0 : i32
    %c0_i32_1 = arith.constant 0 : i32
    return %arg0, %c0_i32, %c0_i32_0 : i32, i32, i32
  }
  func.func @transform_4(%arg0: i32, %arg1: i32) -> (i32, i32, i32) {
    %c0_i32 = arith.constant 0 : i32
    %c0_i32_0 = arith.constant 0 : i32
    return %arg0, %arg1, %c0_i32 : i32, i32, i32
  }
  func.func @transform_5(%arg0: i32, %arg1: i32) -> (i32, i32) {
    %c0_i32 = arith.constant 0 : i32
    %c0_i32_0 = arith.constant 0 : i32
    %c0_i32_1 = arith.constant 0 : i32
    return %c0_i32, %c0_i32_0 : i32, i32
  }
  func.func @transform_6(%arg0: i32, %arg1: i32) -> (i32, i32, i32) {
    %c0_i32 = arith.constant 0 : i32
    %c0_i32_0 = arith.constant 0 : i32
    %c0_i32_1 = arith.constant 0 : i32
    %c0_i32_2 = arith.constant 0 : i32
    return %c0_i32, %c0_i32_0, %c0_i32_1 : i32, i32, i32
  }
  func.func @transform_7(%arg0: i32, %arg1: i32) -> (i32, i32, i32) {
    %c0_i32 = arith.constant 0 : i32
    %c0_i32_0 = arith.constant 0 : i32
    %c0_i32_1 = arith.constant 0 : i32
    %c0_i32_2 = arith.constant 0 : i32
    return %c0_i32, %c0_i32_0, %c0_i32_1 : i32, i32, i32
  }
  func.func @transform_8(%arg0: i32, %arg1: i32) -> (i32, i32) {
    %c0_i32 = arith.constant 0 : i32
    %c0_i32_0 = arith.constant 0 : i32
    %c0_i32_1 = arith.constant 0 : i32
    return %c0_i32, %c0_i32_0 : i32, i32
  }
  func.func @transform_9(%arg0: i32, %arg1: i32) -> (i32, i32) {
    %c0_i32 = arith.constant 0 : i32
    %c0_i32_0 = arith.constant 0 : i32
    %c0_i32_1 = arith.constant 0 : i32
    return %c0_i32, %c0_i32_0 : i32, i32
  }
  func.func @transform_10(%arg0: i32, %arg1: i32) -> (i32, i32, i32) {
    %c0_i32 = arith.constant 0 : i32
    %c0_i32_0 = arith.constant 0 : i32
    return %arg0, %arg1, %c0_i32 : i32, i32, i32
  }
}

</mosaic_0001>

<bundles_post_ra>
// kernel: tpu_custom_call.1
= control target key start
LH: loop header
LB: loop body
LE: loop exit
PB: predicated region body
PF: predicated region fallthrough
CT: control target
= control target key end

     0   :  { %s2162_s0 = inlined_call_operand.vmem [shape: f32[2,4], index: 0, kind: input, shape index: {}]   ;;  %s2163_s1 = inlined_call_operand.<no memory space> [shape: f32[1], index: 1, kind: input, shape index: {}]   ;;  %s2164_s2 = inlined_call_operand.hbm [shape: f32[2,8,32], index: 2, kind: input, shape index: {}]   ;;  %s2165_s3 = inlined_call_operand.hbm [shape: f32[2,8,32], index: 3, kind: input, shape index: {}]   ;;  %s2166_s4 = inlined_call_operand.hbm [shape: f32[2,8,8], index: 4, kind: input, shape index: {}]   ;;  %s2167_s5 = inlined_call_operand.vmem [shape: f32[32,128], index: 5, kind: input, shape index: {}]   ;;  %s2168_s6 = inlined_call_operand.vmem [shape: f32[4,32,32], index: 6, kind: input, shape index: {}]   ;;  %s2169_s7 = inlined_call_operand.hbm [shape: f32[4,32,32], index: 7, kind: input, shape index: {}]   ;;  %s2170_s8 = inlined_call_operand.vmem [shape: f32[128,32], index: 8, kind: input, shape index: {}]   ;;  %s2171_s9 = inlined_call_operand.vmem [shape: f32[1,32], index: 9, kind: input, shape index: {}]   ;;  %s2172_s10 = inlined_call_operand.hbm [shape: f32[2,8,32], index: 10, kind: output, shape index: {}]  }
   0x1   :  { %2184 = sst [smem:[#allocation28_spill]] %s2162_s0 }
   0x2   :  { %2185 = sst [smem:[#allocation29_spill]] %s2165_s3 }
   0x3   :  { %2186 = sst [smem:[#allocation30_spill]] %s2169_s7 }
   0x4   :  { %2187 = sst [smem:[#allocation31_spill]] %s2170_s8 }
   0x5   :  { %2188 = sst [smem:[#allocation32_spill]] %s2171_s9 }
   0x6   :  { %2189 = sst [smem:[#allocation33_spill]] %s2172_s10 }
   0x7   :  { %15 = sst [smem:[#allocation4]] %s2163_s1 }
   0x8   :  { %16 = vsyncpa [#allocation8], 0 }
   0x9   :  { %17 = vsyncpa [#allocation6], 0 }
   0xa   :  { %19 = vsyncpa [#allocation6 + $0x1], 0 }
   0xb   :  { %20 = vsyncpa [#allocation11], 0 }
   0xc   :  { %22 = vsyncpa [#allocation11 + $0x1], 0 }
   0xd   :  { %23 = vsyncpa [#allocation14], 0 }
   0xe   :  { %24 = vsyncpa [#allocation7], 0 }
   0xf   :  { %26 = vsyncpa [#allocation7 + $0x1], 0  ;;  %s1779_s15 = smov 0   ;;  %s1781_s16 = smov 0  }
  0x10   :  { %s1783_s17 = smov 0   ;;  %s1785_s18 = smov 0  }
  0x11   :  { %s1787_s19 = smov 0   ;;  %s1789_s20 = smov 0  }
  0x12 LB: > { %2190 = sst [smem:[#allocation21_spill]] %s1692_s15  ;;  %s44_s1 = sadd.s32 1, %s1708_s19  ;;  %s1712_s20 = sphi %s1789_s20, %s32_s20   ;;  %s1708_s19 = sphi %s1787_s19, %s2215_s19   ;;  %s1704_s18 = sphi %s1785_s18, %s2214_s18   ;;  %s1700_s17 = sphi %s1783_s17, %s2218_s17   ;;  %s1696_s16 = sphi %s1781_s16, %s2217_s16   ;;  %s1692_s15 = sphi %s1779_s15, %s2216_s15  }
  0x13   : > { %2191 = sst [smem:[#allocation22_spill]] %s1708_s19  ;;  %s95_s21 = sadd.s32 1, %s1700_s17 }
  0x14   : > { %2192 = sst [smem:[#allocation23_spill]] %s1712_s20  ;;  %p46_p0 = scmp.ge.s32.totalorder %s44_s1, 2 }
  0x15   : > { %p102_p1 = scmp.ne.s32.totalorder %s1700_s17, %s1696_s16  ;;  %p103_p2 = scmp.eq.s32.totalorder %s1712_s20, 0 }
  0x16   : > { %p1306_p3 = scmp.ge.s32.totalorder %s1712_s20, 2  ;;  %s2220_s1 = smov (%p46_p0, %s44_s1), 0 }
  0x17   : > { %2193 = sst [smem:[#allocation24_spill]] %s2220_s1  ;;  %p104_p4 = por %p103_p2, %p102_p1 }
  0x18   : > { %p1397_p5 = scmp.lt.s32.totalorder %s1712_s20, 2  ;;  %s90_s22 = ssub.s32 %s1708_s19, %s2220_s1 }
  0x19   : > { %s2173_s23 = sand.u32 1, %s1700_s17   ;;  %p93_p6 = scmp.eq.s32.totalorder %s90_s22, 0 }
  0x1a   : > { %s1826_s24 = sshll.u32 %s2173_s23, 3  ;;  %s1829_s25 = sshll.u32 %s1708_s19, 3 }
  0x1b   : > { %p1831_p7 = pnand %p1397_p5, %p104_p4  ;;  %s378_s28 = sand.u32 1, %s1712_s20  }
  0x1c   : > { %s1836_s27 = scalar_select %p93_p6, %s1700_s17, %s95_s21  }
  0x1d   : > { %s2196_s3 = sld [smem:[#allocation29_spill]]  ;;  %s382_s12 = scalar_lea.vmem [#allocation10], %s1826_s24 }
  0x1e   : > { %2195 = sst [smem:[#allocation25_spill]] %s1836_s27  ;;  %s390_s13 = sshll.u32 %s382_s12, 4  ;;  %s391_s13 = int_to_ptr.vmem [resolvable:$true] %s390_s13 }
  0x1f   : > { %s1844_s22 = scalar_lea.sflag [#allocation11], %s378_s28  ;;  %s1850_s21 = sadd.s32 4294967295, %s1712_s20  }
  0x20   : > { %s1302_s29 = sadd.s32 4294967294, %s1712_s20   ;;  %p108_p8 = scmp.ne.s32.totalorder %s1696_s16, %s1692_s15 }
  0x21   : > { %p109_p9 = scmp.eq.s32.totalorder %s1850_s21, 0  ;;  %p293_p10 = scmp.eq.s32.totalorder %s1850_s21, 1 }
  0x22   : > { %p299_p11 = scmp.eq.s32.totalorder %s1302_s29, 1  ;;  %p1303_p12 = scmp.ge.s32.totalorder %s1712_s20, 1 }
  0x23   : > { %s386_s11 = scalar_lea.hbm %s2196_s3, %s1829_s25  ;;  %p1860_p13 = por %p109_p9, %p108_p8 }
  0x24   : > { %s388_s14 = sshll.u32 %s386_s11, 4  ;;  %p1867_p0 = por %p293_p10, %p102_p1  ;;  %s389_s14 = int_to_ptr.hbm [resolvable:$true] %s388_s14 }
  0x25   : > { %1387 = dma.hbm_to_vmem [thread:$0]  (!%p1831_p7), %s389_s14, 128, %s391_s13, %s1844_s22  }
  0x26   : > { %s2198_s28 = scalar_select %p1867_p0, 1, 0 }
  0x27   : > { %p1871_p2 = por %p299_p11, %p108_p8  ;;  %p306_p4 = scmp.lt.s32.totalorder %s1712_s20, 3 }
  0x28   : > { %2199 = sst [smem:[#allocation26_spill]] %s2198_s28  ;;  %s1714_s12 = smov [#allocation13]  }
  0x29   : > { %s2200_s11 = scalar_select %p1871_p2, 1, 0 }
  0x2a   : > { %s2202_s0 = sld [smem:[#allocation28_spill]]  ;;  %p1879_p5 = pnand %p1303_p12, %p306_p4 }
  0x2b   : > { %2201 = sst [smem:[#allocation27_spill]] %s2200_s11  ;;  %s338_s13 = sshll.u32 %s1714_s12, 4  ;;  %s339_s13 = int_to_ptr.vmem [resolvable:$true] %s338_s13 }
  0x2c   : > { %s2204_s7 = sld [smem:[#allocation30_spill]]  ;;  %p1374_p1 = pneg %p1879_p5 }
  0x2d   : > { %s1716_s19 = smov 128   ;;  %s1717_s27 = smov 8  }
  0x2e   : > { %p1375_p6 = pnand %p1374_p1, %p109_p9  ;;  %s362_s11 = scalar_lea.vmem [#allocation9], %s1826_s24 }
  0x2f   : > { %s371_s15 = sshll.u32 %s362_s11, 4  ;;  %s2205_s9 = sand.u32 1, %s1700_s17   ;;  %s372_s15 = int_to_ptr.vmem [resolvable:$true] %s371_s15 }
  0x30   : > { %s318_s14 = sshll.u32 %s2202_s0, 4  ;;  %s1715_s0 = smov [#allocation5]   ;;  %s319_s14 = int_to_ptr.vmem [resolvable:$true] %s318_s14 }
  0x31   : > { %1377 = dma.vmem_to_smem (!%p1375_p6), %s319_s14, 32, %s1715_s0, [#allocation8]  }
  0x32   : > { %s336_s1 = sshll.u32 %s2204_s7, 4  ;;  %s367_s7 = scalar_lea.hbm %s2164_s2, %s1829_s25  ;;  %s337_s1 = int_to_ptr.hbm [resolvable:$true] %s336_s1 }
  0x33   : > { %1380 = dma.hbm_to_vmem [thread:$0]  (!%p1375_p6), %s337_s1, 2048, %s339_s13, [#allocation14], %s1716_s19, %s1716_s19, %s1717_s27  }
  0x34   : > { %s369_s20 = sshll.u32 %s367_s7, 4  ;;  %s359_s12 = scalar_lea.sflag [#allocation6], %s2205_s9  ;;  %s370_s20 = int_to_ptr.hbm [resolvable:$true] %s369_s20 }
  0x35   : > { %1384 = dma.hbm_to_vmem [thread:$0]  (!%p1831_p7), %s370_s20, 128, %s372_s15, %s359_s12  }
  0x36   : > { %s406_s14 = scalar_lea.hbm %s2166_s4, %s1829_s25  ;;  %s401_s8 = scalar_lea.vmem [#allocation12], %s1826_s24 }
  0x37   : > { %s408_s10 = sshll.u32 %s406_s14, 4  ;;  %s410_s19 = sshll.u32 %s401_s8, 4  ;;  %s409_s10 = int_to_ptr.hbm [resolvable:$true] %s408_s10  ;;  %s411_s19 = int_to_ptr.vmem [resolvable:$true] %s410_s19 }
  0x38   : > { %1390 = dma.hbm_to_vmem [thread:$0]  (!%p1831_p7), %s409_s10, 128, %s411_s19, %s1844_s22  }
  0x39   : > { %419 = sbr.rel (%p1879_p5) target bundleno = 1778 (0x6f2), region = 60 }
  0x3e   : > { %1671 = dma.done.wait (%p109_p9), [#allocation8], 32  }
  0x3f   : > { %1673 = vsyncadd (%p109_p9), [#allocation8], 4294967264  ;;  %s1914_s7 = sand.u32 1, %s1696_s16  }
  0x40   : > { %s1917_s8 = sshll.u32 %s1914_s7, 3  ;;  %s427_s9 = scalar_lea.sflag [#allocation6], %s1914_s7 }
  0x41   : > { %s430_s10 = scalar_lea.vmem [#allocation9], %s1917_s8 }
  0x42   : > { %1675 = dma.done.wait (%p1860_p13), %s427_s9, 128  }
  0x43   : > { %1677 = vsyncadd (%p1860_p13), %s427_s9, 4294967168  ;;  %s436_s15 = sand.u32 1, %s1850_s21   ;;  %s440_s1 = scalar_lea.vmem [#allocation10], %s1917_s8 }
  0x44   : > { %s437_s20 = scalar_lea.sflag [#allocation11], %s436_s15 }
  0x45   : > { %1679 = dma.done.wait (%p1860_p13), %s437_s20, 256  }
  0x46   : > { %1681 = vsyncadd (%p1860_p13), %s437_s20, 4294967040  ;;  %s450_s24 = scalar_lea.vmem [#allocation12], %s1917_s8 }
  0x47   : > { %1683 = dma.done.wait (%p109_p9), [#allocation14], 2048  }
  0x48   : > { %1685 = vsyncadd (%p109_p9), [#allocation14], 4294965248 }
  0x49   : > { %461 = sfence }
  0x4a   : > { %v511_v0 = vld [vmem:[%s2167_s5 + $0x18] sm:$0xff]  ;;  %v510_v1 = vld [vmem:[%s2167_s5 + $0x10] sm:$0xff]  ;;  %v509_v3 = vld [vmem:[%s2167_s5 + $0x8] sm:$0xff]  ;;  %vm512_vm0 = vcmask 261120   ;;  %s1718_s29 = smov 96   ;;  %vm567_vm1 = vcmask 64512  }
  0x4b   : > { %528 = vmatpush.msra.mxu0 %v511_v0  ;;  %v630_v2 = vld [vmem:[#allocation13 + $0x18] sm:$0xff]  ;;  %v629_v4 = vld [vmem:[#allocation13 + $0x10] sm:$0xff]  ;;  %v1945_v5 = vld [vmem:[%s440_s1] sm:$0xff]  ;;  %s1719_s13 = smov 32   ;;  %s507_s3 = sld [smem:[#allocation4]] }
  0x4c   : > { %643 = vmatpush.msra.mxu3 %v630_v2  ;;  %v628_v6 = vld [vmem:[#allocation13 + $0x8] sm:$0xff]  ;;  %618 = vmatpush.msra.mxu2 %v1945_v5  ;;  %v504_v8 = vld [vmem:[%s430_s10] sm:$0xff]  ;;  %v627_v9 = vld [vmem:[#allocation13] sm:$0xff]  ;;  %s1978_s23 = sshll.u32 %s1704_s18, 7  ;;  %s1720_s14 = smov 64  }
  0x4d   : > { %529 = vmatpush.msra.mxu0 %v510_v1  ;;  %v508_v7 = vld [vmem:[%s2167_s5] sm:$0xff]  ;;  %1345 = vmatpush.xpose.msk.msra.mxu1 %vm512_vm0, %v1945_v5  ;;  %v765_v11 = vld [vmem:[#allocation13 + $0x38] sm:$0xff]  ;;  %v764_v12 = vld [vmem:[#allocation13 + $0x30] sm:$0xff]  ;;  %s593_s12 = sld [smem:[#allocation5 + %s1978_s23]]  ;;  %s725_s19 = sadd.s32 1, %s1978_s23 }
  0x4e   : > { %644 = vmatpush.msra.mxu3 %v629_v4  ;;  %v763_v13 = vld [vmem:[#allocation13 + $0x28] sm:$0xff]  ;;  %v762_v14 = vld [vmem:[#allocation13 + $0x20] sm:$0xff]  ;;  %v506_v26 = vld [vmem:[%s450_s24] sm:$0xff]  ;;  %s726_s9 = sld [smem:[#allocation5 + %s725_s19]]  ;;  %s865_s19 = sadd.s32 2, %s1978_s23 }
  0x4f   : > { %530 = vmatpush.msra.mxu0 %v509_v3  ;;  %v905_v52 = vld [vmem:[#allocation13 + $0x58] sm:$0xff]  ;;  %v904_v53 = vld [vmem:[#allocation13 + $0x50] sm:$0xff]  ;;  %v903_v54 = vld [vmem:[#allocation13 + $0x48] sm:$0xff]  ;;  %s1005_s10 = sadd.s32 3, %s1978_s23  ;;  %s2207_s30 = sld [smem:[#allocation33_spill]] }
  0x50   : > { %645 = vmatpush.msra.mxu3 %v628_v6  ;;  %v902_v55 = vld [vmem:[#allocation13 + $0x40] sm:$0xff]  ;;  %v1045_v56 = vld [vmem:[#allocation13 + $0x78] sm:$0xff]  ;;  %v1044_v57 = vld [vmem:[#allocation13 + $0x70] sm:$0xff]  ;;  %s1006_s15 = sld [smem:[#allocation5 + %s1005_s10]] }
  0x51   : > { %531 = vmatpush.msra.mxu0 %v508_v7  ;;  %s537_s0 = ssub.f32 0.0, %s507_s3  ;;  %v1043_v58 = vld [vmem:[#allocation13 + $0x68] sm:$0xff]  ;;  %v1042_v59 = vld [vmem:[#allocation13 + $0x60] sm:$0xff]  ;;  %v625_v61 = vld [vmem:[%s2168_s6 + $0x10] sm:$0xff] }
  0x52   : > { %1320 = vmatmul.msk.f32.vlgmr.msra.gmra.mxu0 %vm512_vm0, %v504_v8  ;;  %646 = vmatpush.msra.mxu3 %v627_v9  ;;  %v626_v60 = vld [vmem:[%s2168_s6 + $0x18] sm:$0xff]  ;;  %v624_v62 = vld [vmem:[%s2168_s6 + $0x8] sm:$0xff]  ;;  %v623_v1 = vld [vmem:[%s2168_s6] sm:$0xff]  ;;  %s2206_s10 = sld [smem:[#allocation31_spill]] }
  0x53   : > { %1321 = vmatpush.xpose.msk.msrb.mxu0 %vm512_vm0, %v1945_v5  ;;  %v538_v27 = vstv %s537_s0  ;;  %v594_v32 = vstv %s593_s12  ;;  %666 = vmatpush.msrb.mxu2 %v626_v60  ;;  %v1333_v3 = vld [vmem:[%s2168_s6 + $0x38] sm:$0xff]  ;;  %v1332_v4 = vld [vmem:[%s2168_s6 + $0x30] sm:$0xff]  ;;  %s2209_s12 = sld [smem:[#allocation32_spill]]  ;;  %s503_s0 = scalar_lea.vmem [#allocation15], %s1917_s8 }
  0x54   : > { %1327 = vmatpush.xpose.msk.msrb.mxu3 %vm512_vm0, %v1945_v5  ;;  %v1983_v30 = vmul.f32 %v538_v27, %v506_v26  ;;  %v727_v63 = vstv %s726_s9  ;;  %v1330_v26 = vld [vmem:[%s2168_s6 + $0x20] sm:$0xff]  ;;  %s866_s9 = sld [smem:[#allocation5 + %s865_s19]]  ;;  %s1152_s19 = sshll.u32 %s503_s0, 4  ;;  %s1153_s19 = int_to_ptr.vmem [resolvable:$true] %s1152_s19 }
  0x55   : > { %667 = vmatpush.msrb.mxu2 %v625_v61  ;;  %s1638_s8 = scalar_lea.hbm %s2207_s30, 16 }
  0x56   : > { %v595_v33 = vmul.f32 %v594_v32, %v1983_v30  ;;  %v728_v0 = vmul.f32 %v727_v63, %v1983_v30 }
  0x57   : > { %751 = vmatpush.msra.mxu0 %v1945_v5  ;;  %668 = vmatpush.msrb.mxu2 %v624_v62 }
  0x58   : > { %v596_v36 = vmul.f32 1.442695, %v595_v33  ;;  %v729_v6 = vmul.f32 1.442695, %v728_v0 }
  0x59   : > { %669 = vmatpush.msrb.mxu2 %v623_v1 }
  0xcf   : > { %v1959_v10 = vpop.f32.mrf.mxu0 }
  0xd0   : > { %677 = vrot.lane.b32.xlu0 %v1959_v10, %s1718_s29  ;;  %1322 = vmatmul.msk.f32.vlgmr.msrb.gmra.mxu0 %vm512_vm0, %v1959_v10 }
  0xd1   : > { %1325 = vmatmul.msk.f32.vlgmr.msra.gmra.mxu3 %vm512_vm0, %v1959_v10  ;;  %891 = vmatpush.msrb.mxu0 %v1945_v5 }
  0xd2   : > { %778 = vmatpush.msra.mxu3 %v765_v11 }
  0xd4   : > { %779 = vmatpush.msra.mxu3 %v764_v12 }
  0xd6   : > { %780 = vmatpush.msra.mxu3 %v763_v13 }
  0xd8   : > { %781 = vmatpush.msra.mxu3 %v762_v14 }
 0x142   : > { %v678_v15 = vpop.permute.xlu0 %677 }
 0x143   : > { %1328 = vmatmul.msk.f32.vlgmr.msrb.gmra.mxu3 %vm512_vm0, %v678_v15 }
 0x144   : > { %918 = vmatpush.msrb.mxu3 %v905_v52  ;;  %v1007_v52 = vstv %s1006_s15  ;;  %s1139_s15 = scalar_lea.sflag [#allocation7], %s1914_s7 }
 0x146   : > { %919 = vmatpush.msrb.mxu3 %v904_v53 }
 0x148   : > { %920 = vmatpush.msrb.mxu3 %v903_v54  ;;  %v1008_v54 = vmul.f32 %v1007_v52, %v1983_v30 }
 0x14a   : > { %921 = vmatpush.msrb.mxu3 %v902_v55 }
 0x14b   : > { %1334 = vmatmul.msk.f32.vlgmr.msra.gmra.mxu3 %vm512_vm0, %v678_v15 }
 0x14c   : > { %1058 = vmatpush.msra.mxu3 %v1045_v56 }
 0x14d   : > { %v564_v16 = vpop.f32.mrf.mxu0 }
 0x14e   : > { %v568_v17 = vsel %vm567_vm1, %v564_v16, -inf  ;;  %1059 = vmatpush.msra.mxu3 %v1044_v57 }
 0x14f   : > { %569 = vmax.xlane.f32.xlu0 %v568_v17 }
 0x150   : > { %1060 = vmatpush.msra.mxu3 %v1043_v58  ;;  %v1009_v58 = vmul.f32 1.442695, %v1008_v54 }
 0x152   : > { %1061 = vmatpush.msra.mxu3 %v1042_v59 }
 0x154   : > { %v1971_v18 = vpop.f32.mrf.mxu3 }
 0x1c2   : > { %v570_v19 = vpop.xlane.xlu0 %569 }
 0x1c3   : > { %v571_v20 = vsub.f32 %v564_v16, %v570_v19 }
 0x1c5   : > { %v572_v21 = vmul.f32 1.442695, %v571_v20 }
 0x1c6   : > { %v698_v22 = vpop.f32.mrf.mxu3 }
 0x1c7   : > { %1457 = vpow2.f32 %v572_v21  ;;  %v701_v23 = vsel %vm567_vm1, %v698_v22, -inf }
 0x1c8   : > { %702 = vmax.xlane.f32.xlu1 %v701_v23 }
 0x1cd   : > { %v1458_v24 = vpop.eup %1457 }
 0x1ce   : > { %v574_v25 = vsel %vm567_vm1, %v1458_v24, 0.0 }
 0x1d0   : > { %575 = vadd.xlane.f32.xlu1 %v574_v25  ;;  %v1331_v25 = vld [vmem:[%s2168_s6 + $0x28] sm:$0xff] }
 0x1e9   : > { %957 = vrot.lane.b32.xlu1 %v1959_v10, %s1719_s13 }
 0x23b   : > { %v703_v28 = vpop.xlane.xlu1 %702 }
 0x23c   : > { %v704_v29 = vsub.f32 %v698_v22, %v703_v28 }
 0x23e   : > { %v705_v31 = vmul.f32 1.442695, %v704_v29 }
 0x240   : > { %1459 = vpow2.f32 %v705_v31 }
 0x243   : > { %v576_v34 = vpop.xlane.xlu1 %575 }
 0x244   : > { %1461 = vrcp.f32 %v576_v34  ;;  %v588_v41 = vand.u32 2147483648, %v576_v34  ;;  %v586_v43 = vand.u32 2147483647, %v576_v34  ;;  %vm582_vm3 = vweird.f32 %v576_v34 }
 0x245   : > { %1463 = vpow2.f32 %v596_v36 }
 0x246   : > { %v1986_v35 = vpop.eup %1459  ;;  %v589_v46 = vor.u32 1.1754944e-38, %v588_v41  ;;  %vm587_vm5 = vcmp.eq.f32.partialorder %v586_v43, 8.507059e+37 }
 0x247   : > { %v707_v37 = vsel %vm567_vm1, %v1986_v35, 0.0 }
 0x248   : > { %708 = vadd.xlane.f32.xlu2 %v707_v37 }
 0x24a   : > { %v1462_v38 = vpop.eup %1461 }
 0x24b   : > { %v578_v39 = vmul.f32 %v1462_v38, %v576_v34  ;;  %vm583_vm2 = vweird.f32 %v1462_v38  ;;  %v1464_v44 = vpop.eup %1463 }
 0x24c   : > { %vm584_vm4 = vmor %vm582_vm3, %vm583_vm2  ;;  %v598_v48 = vmul.f32 %v1464_v44, %v1458_v24  ;;  %v867_v44 = vstv %s866_s9 }
 0x24d   : > { %v579_v40 = vsub.f32 1.0, %v578_v39 }
 0x24f   : > { %v580_v42 = vmul.f32 %v1462_v38, %v579_v40 }
 0x251   : > { %v581_v45 = vadd.f32 %v1462_v38, %v580_v42  ;;  %v783_v42 = vpop.f32.mrf.mxu3 }
 0x253   : > { %v585_v47 = vsel %vm584_vm4, %v1462_v38, %v581_v45  ;;  %v1342_v45 = vld [vmem:[%s2168_s6 + $0x58] sm:$0xff]  ;;  %vm813_vm4 = vcmask 523520  }
 0x254   : > { %v590_v49 = vsel %vm587_vm5, %v589_v46, %v585_v47  ;;  %v1341_v46 = vld [vmem:[%s2168_s6 + $0x50] sm:$0xff]  ;;  %v1340_v47 = vld [vmem:[%s2168_s6 + $0x48] sm:$0xff]  ;;  %vm1093_vm5 = vcmask 1048320  }
 0x255   : > { %v599_v50 = vmul.f32 %v598_v48, %v590_v49  ;;  %v868_v48 = vmul.f32 %v867_v44, %v1983_v30  ;;  %v1100_v44 = vld [vmem:[%s2206_s10 + $0x18] sm:$0xff] }
 0x257   : > { %1324 = vmatmul.msk.f32.vlgmr.msra.gmra.mxu2 %vm567_vm1, %v599_v50  ;;  %v1339_v50 = vld [vmem:[%s2168_s6 + $0x40] sm:$0xff] }
 0x258   : > { %801 = vmatpush.msra.mxu2 %v1333_v3 }
 0x25a   : > { %802 = vmatpush.msra.mxu2 %v1332_v4 }
 0x25b   : > { %v958_v51 = vpop.permute.xlu1 %957 }
 0x25c   : > { %1346 = vmatmul.msk.f32.vlgmr.msra.gmra.mxu1 %vm512_vm0, %v958_v51  ;;  %803 = vmatpush.msra.mxu2 %v1331_v25 }
 0x25e   : > { %804 = vmatpush.msra.mxu2 %v1330_v26 }
 0x260   : > { %817 = vrot.lane.b32.xlu2 %v1959_v10, %s1720_s14 }
 0x2bb   : > { %v709_v2 = vpop.xlane.xlu2 %708 }
 0x2bc   : > { %1465 = vrcp.f32 %v709_v2  ;;  %v721_v11 = vand.u32 2147483648, %v709_v2  ;;  %v719_v13 = vand.u32 2147483647, %v709_v2  ;;  %vm715_vm7 = vweird.f32 %v709_v2 }
 0x2bd   : > { %1467 = vpow2.f32 %v729_v6 }
 0x2be   : > { %v722_v16 = vor.u32 1.1754944e-38, %v721_v11  ;;  %vm720_vm9 = vcmp.eq.f32.partialorder %v719_v13, 8.507059e+37 }
 0x2c2   : > { %v1466_v7 = vpop.eup %1465 }
 0x2c3   : > { %v711_v8 = vmul.f32 %v1466_v7, %v709_v2  ;;  %v818_v9 = vpop.permute.xlu2 %817  ;;  %vm716_vm6 = vweird.f32 %v1466_v7  ;;  %v1468_v14 = vpop.eup %1467 }
 0x2c4   : > { %1343 = vmatmul.msk.f32.vlgmr.msrb.gmra.mxu3 %vm512_vm0, %v818_v9  ;;  %vm717_vm8 = vmor %vm715_vm7, %vm716_vm6  ;;  %v731_v17 = vmul.f32 %v1468_v14, %v1986_v35 }
 0x2c5   : > { %v712_v10 = vsub.f32 1.0, %v711_v8 }
 0x2c7   : > { %v713_v12 = vmul.f32 %v1466_v7, %v712_v10 }
 0x2c9   : > { %v714_v15 = vadd.f32 %v1466_v7, %v713_v12 }
 0x2cb   : > { %v718_v19 = vsel %vm717_vm8, %v1466_v7, %v714_v15 }
 0x2cc   : > { %v723_v20 = vsel %vm720_vm9, %v722_v16, %v718_v19  ;;  %1352 = vmatmul.msk.f32.vlgmr.msra.gmra.mxu3 %vm512_vm0, %v958_v51  ;;  %v869_v51 = vmul.f32 1.442695, %v868_v48 }
 0x2cd   : > { %v732_v21 = vmul.f32 %v731_v17, %v723_v20  ;;  %v1351_v20 = vld [vmem:[%s2168_s6 + $0x78] sm:$0xff] }
 0x2cf   : > { %1329 = vmatmul.msk.f32.vlgmr.msra.gmra.mxu0 %vm567_vm1, %v732_v21  ;;  %v1350_v21 = vld [vmem:[%s2168_s6 + $0x70] sm:$0xff] }
 0x2d0   : > { %1031 = vmatpush.msra.mxu0 %v1945_v5 }
 0x2d9   : > { %v978_v22 = vpop.f32.mrf.mxu1 }
 0x2da   : > { %v620_v23 = vpop.f32.mrf.mxu2  ;;  %v981_v24 = vsel %vm567_vm1, %v978_v22, -inf }
 0x2db   : > { %1326 = vmatmul.msk.f32.vlgmr.msrb.gmra.mxu2 %vm512_vm0, %v620_v23  ;;  %982 = vmax.xlane.f32.xlu1 %v981_v24  ;;  %v1348_v23 = vld [vmem:[%s2168_s6 + $0x60] sm:$0xff] }
 0x2dc   : > { %1336 = vmatpush.xpose.msk.msrb.mxu2 %vm512_vm0, %v1945_v5 }
 0x347   : > { %v923_v26 = vpop.f32.mrf.mxu3 }
 0x34c   : > { %v753_v27 = vpop.f32.mrf.mxu0 }
 0x34d   : > { %1335 = vmatmul.msk.f32.vlgmr.msra.gmra.mxu2 %vm512_vm0, %v753_v27 }
 0x34e   : > { %v983_v34 = vpop.xlane.xlu1 %982  ;;  %941 = vmatpush.msra.mxu2 %v1342_v45  ;;  %v1099_v45 = vld [vmem:[%s2206_s10 + $0x10] sm:$0xff] }
 0x34f   : > { %v984_v5 = vsub.f32 %v978_v22, %v983_v34  ;;  %v1349_v22 = vld [vmem:[%s2168_s6 + $0x68] sm:$0xff]  ;;  %v1111_v34 = vld [vmem:[%s2206_s10 + $0x70] sm:$0xff] }
 0x350   : > { %942 = vmatpush.msra.mxu2 %v1341_v46  ;;  %v1098_v46 = vld [vmem:[%s2206_s10 + $0x8] sm:$0xff] }
 0x351   : > { %v985_v38 = vmul.f32 1.442695, %v984_v5  ;;  %v1108_v5 = vld [vmem:[%s2206_s10 + $0x58] sm:$0xff] }
 0x352   : > { %943 = vmatpush.msra.mxu2 %v1340_v47  ;;  %v1097_v47 = vld [vmem:[%s2206_s10] sm:$0xff] }
 0x354   : > { %944 = vmatpush.msra.mxu2 %v1339_v50 }
 0x355   : > { %1337 = vmatmul.msk.f32.vlgmr.msrb.gmra.mxu2 %vm512_vm0, %v818_v9 }
 0x356   : > { %1081 = vmatpush.msrb.mxu2 %v1351_v20 }
 0x358   : > { %1082 = vmatpush.msrb.mxu2 %v1350_v21 }
 0x35a   : > { %1083 = vmatpush.msrb.mxu2 %v1349_v22 }
 0x35c   : > { %1084 = vmatpush.msrb.mxu2 %v1348_v23 }
 0x35e   : > { %v671_v28 = vpop.f32.mrf.mxu2 }
 0x35f   : > { %v672_v29 = vadd.f32 %v671_v28, %v1971_v18 }
 0x361   : > { %674 = vst.msk [vmem:[#allocation3] sm:$0xff] %vm512_vm0, %v672_v29  ;;  %v1063_v29 = vpop.f32.mrf.mxu3 }
 0x3d0   : > { %v806_v31 = vpop.f32.mrf.mxu2 }
 0x3d1   : > { %v807_v43 = vadd.f32 %v806_v31, %v783_v42  ;;  %v1102_v42 = vld [vmem:[%s2206_s10 + $0x28] sm:$0xff] }
 0x3d8   : > { %v838_v32 = vpop.f32.mrf.mxu2 }
 0x3d9   : > { %v841_v33 = vsel %vm567_vm1, %v838_v32, -inf }
 0x3da   : > { %842 = vmax.xlane.f32.xlu2 %v841_v33  ;;  %v1112_v33 = vld [vmem:[%s2206_s10 + $0x78] sm:$0xff] }
 0x3db   : > { %1117 = vmatpush.msrb.mxu1 %v1112_v33 }
 0x3dd   : > { %1118 = vmatpush.msrb.mxu1 %v1111_v34 }
 0x44d   : > { %v843_v35 = vpop.xlane.xlu2 %842 }
 0x44e   : > { %v844_v36 = vsub.f32 %v838_v32, %v843_v35  ;;  %v1110_v35 = vld [vmem:[%s2206_s10 + $0x68] sm:$0xff] }
 0x44f   : > { %1119 = vmatpush.msrb.mxu1 %v1110_v35 }
 0x450   : > { %v845_v37 = vmul.f32 1.442695, %v844_v36  ;;  %v1109_v36 = vld [vmem:[%s2206_s10 + $0x60] sm:$0xff] }
 0x451   : > { %1120 = vmatpush.msrb.mxu1 %v1109_v36 }
 0x452   : > { %1469 = vpow2.f32 %v845_v37  ;;  %v1107_v37 = vld [vmem:[%s2206_s10 + $0x50] sm:$0xff] }
 0x453   : > { %1471 = vpow2.f32 %v985_v38  ;;  %1121 = vmatpush.msrb.mxu1 %v1108_v5  ;;  %v1106_v38 = vld [vmem:[%s2206_s10 + $0x48] sm:$0xff] }
 0x455   : > { %1122 = vmatpush.msrb.mxu1 %v1107_v37 }
 0x457   : > { %1123 = vmatpush.msrb.mxu1 %v1106_v38 }
 0x458   : > { %v1470_v39 = vpop.eup %1469 }
 0x459   : > { %v847_v18 = vsel %vm567_vm1, %v1470_v39, 0.0  ;;  %v1472_v40 = vpop.eup %1471 }
 0x45a   : > { %848 = vadd.xlane.f32.xlu0 %v847_v18  ;;  %v987_v41 = vsel %vm567_vm1, %v1472_v40, 0.0 }
 0x462   : > { %988 = vadd.xlane.f32.xlu0 %v987_v41  ;;  %v1103_v41 = vld [vmem:[%s2206_s10 + $0x30] sm:$0xff] }
 0x476   : > { %810 = vrot.lane.b32.xlu0 %v807_v43, %s1719_s13  ;;  %v1101_v43 = vld [vmem:[%s2206_s10 + $0x20] sm:$0xff]  ;;  %s1355_s13 = sshll.u32 %s1704_s18, 3 }
 0x477   : > { %s1150_s21 = scalar_lea.hbm %s2207_s30, %s1355_s13 }
 0x478   : > { %s1154_s9 = sshll.u32 %s1150_s21, 4  ;;  %s1155_s9 = int_to_ptr.hbm [resolvable:$true] %s1154_s9 }
 0x479   : > { %s1632_s18 = sshra.s32 %s1155_s9, 4  ;;  %s1633_s18 = int_to_ptr.hbm [resolvable:$true] %s1632_s18 }
 0x47a   : > { %s1634_s20 = scalar_lea.hbm %s1633_s18, 8  ;;  %p1639_p10 = scmp.lt.s32.totalorder %s1633_s18, %s2207_s30 }
 0x47b   : > { %p1635_p7 = scmp.ne.s32.totalorder %s1633_s18, %s1634_s20  ;;  %p1640_p11 = scmp.lt.s32.totalorder %s1638_s8, %s1634_s20 }
 0x47d   : > { %p1636_p8 = pnand %p1635_p7, %p1867_p0  ;;  %p1641_p12 = por %p1640_p11, %p1639_p10 }
 0x47f   : > { %p1637_p9 = pneg %p1636_p8 }
 0x481   : > { %p1642_p13 = pnand %p1641_p12, %p1637_p9 }
 0x4cd   : > { %v849_v49 = vpop.xlane.xlu0 %848 }
 0x4ce   : > { %1473 = vrcp.f32 %v849_v49  ;;  %v861_v59 = vand.u32 2147483648, %v849_v49  ;;  %v859_v61 = vand.u32 2147483647, %v849_v49  ;;  %vm855_vm11 = vweird.f32 %v849_v49 }
 0x4cf   : > { %1475 = vpow2.f32 %v869_v51  ;;  %v1456_v51 = vld [vmem:[%s2209_s12] ss:$0 sm:$0xff] }
 0x4d0   : > { %v862_v1 = vor.u32 1.1754944e-38, %v861_v59  ;;  %vm860_vm13 = vcmp.eq.f32.partialorder %v859_v61, 8.507059e+37 }
 0x4d4   : > { %v1474_v53 = vpop.eup %1473 }
 0x4d5   : > { %v851_v55 = vmul.f32 %v1474_v53, %v849_v49  ;;  %v989_v56 = vpop.xlane.xlu0 %988  ;;  %vm856_vm10 = vweird.f32 %v1474_v53  ;;  %v1476_v62 = vpop.eup %1475 }
 0x4d6   : > { %1477 = vrcp.f32 %v989_v56  ;;  %vm857_vm12 = vmor %vm855_vm11, %vm856_vm10  ;;  %v871_v2 = vmul.f32 %v1476_v62, %v1470_v39  ;;  %v1001_v8 = vand.u32 2147483648, %v989_v56  ;;  %v999_v10 = vand.u32 2147483647, %v989_v56  ;;  %v1105_v39 = vld [vmem:[%s2206_s10 + $0x40] sm:$0xff] }
 0x4d7   : > { %v852_v57 = vsub.f32 1.0, %v851_v55  ;;  %1479 = vpow2.f32 %v1009_v58  ;;  %vm995_vm15 = vweird.f32 %v989_v56  ;;  %1124 = vmatpush.msrb.mxu1 %v1105_v39 }
 0x4d8   : > { %v1002_v13 = vor.u32 1.1754944e-38, %v1001_v8  ;;  %vm1000_vm3 = vcmp.eq.f32.partialorder %v999_v10, 8.507059e+37 }
 0x4d9   : > { %v853_v60 = vmul.f32 %v1474_v53, %v852_v57 }
 0x4db   : > { %v854_v63 = vadd.f32 %v1474_v53, %v853_v60 }
 0x4dc   : > { %v1478_v0 = vpop.eup %1477 }
 0x4dd   : > { %v858_v3 = vsel %vm857_vm12, %v1474_v53, %v854_v63  ;;  %v991_v30 = vmul.f32 %v1478_v0, %v989_v56  ;;  %vm996_vm14 = vweird.f32 %v1478_v0  ;;  %v1480_v11 = vpop.eup %1479 }
 0x4de   : > { %v863_v4 = vsel %vm860_vm13, %v862_v1, %v858_v3  ;;  %vm997_vm2 = vmor %vm995_vm15, %vm996_vm14  ;;  %v1011_v14 = vmul.f32 %v1480_v11, %v1472_v40  ;;  %v1104_v40 = vld [vmem:[%s2206_s10 + $0x38] sm:$0xff] }
 0x4df   : > { %v992_v6 = vsub.f32 1.0, %v991_v30  ;;  %v872_v7 = vmul.f32 %v871_v2, %v863_v4  ;;  %1125 = vmatpush.msrb.mxu1 %v1104_v40 }
 0x4e1   : > { %v993_v9 = vmul.f32 %v1478_v0, %v992_v6  ;;  %1338 = vmatmul.msk.f32.vlgmr.msrb.gmra.mxu0 %vm567_vm1, %v872_v7  ;;  %1126 = vmatpush.msrb.mxu1 %v1103_v41 }
 0x4e3   : > { %v994_v12 = vadd.f32 %v1478_v0, %v993_v9  ;;  %1127 = vmatpush.msrb.mxu1 %v1102_v42 }
 0x4e5   : > { %v998_v15 = vsel %vm997_vm2, %v1478_v0, %v994_v12  ;;  %1128 = vmatpush.msrb.mxu1 %v1101_v43 }
 0x4e6   : > { %v1003_v16 = vsel %vm1000_vm3, %v1002_v13, %v998_v15 }
 0x4e7   : > { %v1012_v17 = vmul.f32 %v1011_v14, %v1003_v16  ;;  %1129 = vmatpush.msrb.mxu1 %v1100_v44 }
 0x4e8   : > { %v811_v19 = vpop.permute.xlu0 %810 }
 0x4e9   : > { %814 = vst.msk [vmem:[#allocation3] sm:$0xff] %vm813_vm4, %v811_v19  ;;  %1347 = vmatmul.msk.f32.vlgmr.msra.gmra.mxu0 %vm567_vm1, %v1012_v17  ;;  %vm953_vm1 = vcmask 785920   ;;  %1130 = vmatpush.msrb.mxu1 %v1099_v45 }
 0x4eb   : > { %1131 = vmatpush.msrb.mxu1 %v1098_v46 }
 0x4ed   : > { %1132 = vmatpush.msrb.mxu1 %v1097_v47 }
 0x55e   : > { %v893_v24 = vpop.f32.mrf.mxu0 }
 0x55f   : > { %1344 = vmatmul.msk.f32.vlgmr.msra.gmra.mxu2 %vm512_vm0, %v893_v24 }
 0x566   : > { %v1033_v25 = vpop.f32.mrf.mxu0 }
 0x567   : > { %1353 = vmatmul.msk.f32.vlgmr.msrb.gmra.mxu2 %vm512_vm0, %v1033_v25 }
 0x5e2   : > { %v946_v27 = vpop.f32.mrf.mxu2 }
 0x5e3   : > { %v947_v28 = vadd.f32 %v946_v27, %v923_v26 }
 0x5e5   : > { %950 = vrot.lane.b32.xlu2 %v947_v28, %s1720_s14 }
 0x5ea   : > { %v1086_v31 = vpop.f32.mrf.mxu2 }
 0x5eb   : > { %v1087_v32 = vadd.f32 %v1086_v31, %v1063_v29 }
 0x5ed   : > { %1090 = vrot.lane.b32.xlu1 %v1087_v32, %s1718_s29 }
 0x63f   : > { %v951_v18 = vpop.permute.xlu2 %950 }
 0x640   : > { %954 = vst.msk [vmem:[#allocation3] sm:$0xff] %vm953_vm1, %v951_v18 }
 0x65f   : > { %v1091_v48 = vpop.permute.xlu1 %1090 }
 0x660   : > { %1094 = vst.msk [vmem:[#allocation3] sm:$0xff] %vm1093_vm5, %v1091_v48 }
 0x667   : > { %v1095_v49 = vld [vmem:[#allocation3] sm:$0xff] }
 0x668   : > { %1481 = vtanh.f32 %v1095_v49 }
 0x66e   : > { %v1482_v50 = vpop.eup %1481 }
 0x66f   : > { %1133 = vmatmul.f32.vlgmr.msrb.gmra.mxu1 %v1482_v50 }
 0x6ec   : > { %v1134_v52 = vpop.f32.mrf.mxu1 }
 0x6ed   : > { %v1135_v53 = vadd.f32 %v1456_v51, %v1134_v52 }
 0x6ef   : > { %1137 = vst.msk [vmem:[%s503_s0] sm:$0xff] %vm512_vm0, %v1135_v53 }
 0x6f0   : > { %1645 = shalt.err (!%p1642_p13)
}
 0x6f1   : > { %1372 = dma.vmem_to_hbm [thread:$0]  (%p1867_p0), %s1153_s19, 128, %s1155_s9, %s1139_s15  }
 0x6f2 PF: > { %s2210_s7 = sld [smem:[#allocation21_spill]]  ;;  %p1392_p4 = pnand %p1306_p3, %p1871_p2 }
 0x6f3   : > { %s2212_s26 = sld [smem:[#allocation23_spill]] }
 0x6f4   : > { %p1393_p5 = pneg %p1392_p4 }
 0x6f8   : > { %s1166_s27 = sand.u32 1, %s2210_s7  }
 0x6f9   : > { %s1167_s13 = scalar_lea.sflag [#allocation7], %s1166_s27 }
 0x6fa   : > { %1687 = dma.done.wait (%p1393_p5), %s1167_s13, 128  }
 0x6fb   : > { %1689 = vsyncadd (%p1393_p5), %s1167_s13, 4294967168  ;;  %s32_s20 = sadd.s32 1, %s2212_s26   ;;  %s2213_s23 = sld [smem:[#allocation25_spill]] }
 0x6fc   : > { %p29_p1 = scmp.ge.s32.totalorder %s32_s20, 4   ;;  %s2214_s18 = sld [smem:[#allocation22_spill]] }
 0x6fd   : > { %s2215_s19 = sld [smem:[#allocation24_spill]]  ;;  %s2216_s15 = smov %s1696_s16 }
 0x6fe   : > { %s2217_s16 = smov %s1700_s17  ;;  %31 = sbr.rel (!%p29_p1) target bundleno = 18 (0x12), region = 144 }
 0x701   : > { %s2218_s17 = smov %s2213_s23 }
 0x703   :  { %1173 = vsyncpa [#allocation6], 1 }
 0x704   :  { %1175 = vsyncpa [#allocation6 + $0x1], 1 }
 0x705   :  { %1176 = vsyncpa [#allocation11], 1 }
 0x706   :  { %1178 = vsyncpa [#allocation11 + $0x1], 1 }
 0x707   :  { %1179 = vsyncpa [#allocation14], 1 }
 0x708   :  { %1180 = vsyncpa [#allocation7], 1 }
 0x709   :  { %1182 = vsyncpa [#allocation7 + $0x1], 1 }
 0x70a   :  { %1183 = vsyncpa [#allocation8], 1 }
 0x70b   :  { %1185 = vsyncpa [#allocation8 + $0x1], 1 }

</bundles_post_ra>
